<compile_context>
chip_gen: v7x
topology: tpu7x:2x2x1
jax: 0.10.0
libtpu: 0.0.40
codegen_flags: <defaults>
</compile_context>

<pallas_src>
import functools

import jax
import jax.numpy as jnp
import numpy as np
from jax.experimental import pallas as pl
from jax.experimental.pallas import tpu as pltpu


def _res2net_kernel(x_ref, w_ref, b_ref, g_ref, beta_ref, o_ref, yprev_ref, *,
                    kernel_size, dilation, pad, eps):
    """Grid step i runs TDNNBlock_i on (x_{i+1} + y_i); y in VMEM scratch."""
    i = pl.program_id(0)

    # Branch 1 has no residual input: zero the persistent scratch once.
    @pl.when(i == 0)
    def _():
        yprev_ref[...] = jnp.zeros_like(yprev_ref)

    x = x_ref[...] + yprev_ref[...]                      # (B, T, Cin) f32
    B, T, Cin = x.shape
    Cout = o_ref.shape[-1]

    # Reflect padding along time (same as F.pad(..., mode='reflect')).
    if pad > 0:
        left = [x[:, j:j + 1, :] for j in range(pad, 0, -1)]     # x[pad..1]
        right = [x[:, T - 2 - j:T - 1 - j, :] for j in range(pad)]  # x[T-2..]
        xp = jnp.concatenate(left + [x] + right, axis=1)  # (B, T + 2*pad, Cin)
    else:
        xp = x

    # Dilated conv as ONE matmul: gather the K dilated time-shifted views,
    # concatenate along channels -> (B*T, K*Cin), multiply by (K*Cin, Cout).
    views = [xp[:, k * dilation:k * dilation + T, :] for k in range(kernel_size)]
    xcat = jnp.concatenate(views, axis=-1)               # (B, T, K*Cin)
    xm = xcat.reshape(B * T, kernel_size * Cin).astype(jnp.bfloat16)
    wm = w_ref[...].astype(jnp.bfloat16)                 # (K*Cin, Cout)
    acc = jnp.dot(xm, wm, preferred_element_type=jnp.float32)   # (B*T, Cout) f32
    acc = acc.reshape(B, T, Cout) + b_ref[...]           # bias (1,1,Cout)

    # ReLU
    a = jnp.maximum(acc, 0.0)

    # BatchNorm1d, training-mode forward (biased batch stats over (B, T)),
    # single pass: sum and sum-of-squares in f32.
    inv_n = 1.0 / (B * T)
    s1 = jnp.sum(a, axis=(0, 1), keepdims=True)          # (1, 1, Cout)
    s2 = jnp.sum(a * a, axis=(0, 1), keepdims=True)
    mean = s1 * inv_n
    var = s2 * inv_n - mean * mean
    y = g_ref[...] * (a - mean) * jax.lax.rsqrt(var + eps) + beta_ref[...]

    o_ref[...] = y.astype(o_ref.dtype)
    yprev_ref[...] = y                                    # carry to next branch


def res2net_block(x_bct, params, *, scale, kernel_size=3, dilation=1, eps=1e-5):
    """Res2NetBlock forward.  x_bct: (B, C, T) -> (B, C, T)."""
    B, C, T = x_bct.shape
    assert C % scale == 0
    Cc = C // scale
    nb = scale - 1
    # get_padding_elem with stride=1 and odd kernel -> dilation*(K-1)//2 each
    # side (the module's "L_in = in_channels" quirk cancels out).
    pad = dilation * (kernel_size - 1) // 2
    assert T > pad, "reflect padding requires T > pad"

    # (B, C, T) -> chunk-stacked (scale, B, T, Cc), channels on the lane axis.
    x_btc = jnp.transpose(x_bct, (0, 2, 1))                        # (B, T, C)
    x_chunks = x_btc.reshape(B, T, scale, Cc).transpose(2, 0, 1, 3)

    # Stack per-branch parameters; weights flattened to (K*Cin, Cout) so the
    # conv is a single matmul per branch.
    w_stack = jnp.stack([p[0].reshape(kernel_size * Cc, Cc) for p in params])
    b_stack = jnp.stack([p[1].reshape(1, 1, Cc) for p in params])
    g_stack = jnp.stack([p[2].reshape(1, 1, Cc) for p in params])
    be_stack = jnp.stack([p[3].reshape(1, 1, Cc) for p in params])

    kern = functools.partial(_res2net_kernel, kernel_size=kernel_size,
                             dilation=dilation, pad=pad, eps=eps)

    flops = 2 * nb * B * T * kernel_size * Cc * Cc
    bytes_accessed = 4 * (2 * nb * B * T * Cc + int(w_stack.size) + 3 * nb * Cc)

    out = pl.pallas_call(
        kern,
        out_shape=jax.ShapeDtypeStruct((nb, B, T, Cc), jnp.float32),
        grid_spec=pltpu.PrefetchScalarGridSpec(
            num_scalar_prefetch=0,
            grid=(nb,),
            in_specs=[
                # grid step i reads chunk i+1 (chunk 0 is the identity branch).
                pl.BlockSpec((None, B, T, Cc), lambda i: (i + 1, 0, 0, 0)),
                pl.BlockSpec((None, kernel_size * Cc, Cc), lambda i: (i, 0, 0)),
                pl.BlockSpec((None, 1, 1, Cc), lambda i: (i, 0, 0, 0)),
                pl.BlockSpec((None, 1, 1, Cc), lambda i: (i, 0, 0, 0)),
                pl.BlockSpec((None, 1, 1, Cc), lambda i: (i, 0, 0, 0)),
            ],
            out_specs=pl.BlockSpec((None, B, T, Cc), lambda i: (i, 0, 0, 0)),
            scratch_shapes=[pltpu.VMEM((B, T, Cc), jnp.float32)],
        ),
        compiler_params=pltpu.CompilerParams(
            dimension_semantics=("arbitrary",),      # branches are sequential
            vmem_limit_bytes=32 * 1024 * 1024,
        ),
        cost_estimate=pl.CostEstimate(
            flops=flops, transcendentals=nb * Cc, bytes_accessed=bytes_accessed),
    )(x_chunks, w_stack, b_stack, g_stack, be_stack)     # (nb, B, T, Cc)

    # Reassemble: identity chunk 0 + branch outputs, back to (B, C, T).
    y_all = jnp.concatenate([x_chunks[:1], out], axis=0)  # (scale, B, T, Cc)
    return y_all.transpose(1, 0, 3, 2).reshape(B, C, T)


def _reference(x_bct, params, *, scale, kernel_size, dilation, eps=1e-5):
    """Pure-JAX f32 reference mirroring the PyTorch forward."""
    chunks = jnp.split(x_bct, scale, axis=1)
    ys = [chunks[0]]
    for i in range(1, scale):
        z = chunks[i] if i == 1 else chunks[i] + ys[-1]
        w, b, g, be = params[i - 1]
        pad = dilation * (kernel_size - 1) // 2
        zp = jnp.pad(z, ((0, 0), (0, 0), (pad, pad)), mode='reflect')
        wt = jnp.transpose(w, (2, 1, 0))                 # (Cout, Cin, K)
        conv = jax.lax.conv_general_dilated(
            zp, wt, window_strides=(1,), padding='VALID',
            rhs_dilation=(dilation,),
            dimension_numbers=('NCH', 'OIH', 'NCH'))
        conv = conv + b[None, :, None]
        a = jnp.maximum(conv, 0.0)
        mean = jnp.mean(a, axis=(0, 2), keepdims=True)
        var = jnp.mean((a - mean) ** 2, axis=(0, 2), keepdims=True)
        yn = g[None, :, None] * (a - mean) / jnp.sqrt(var + eps) + be[None, :, None]
        ys.append(yn)
    return jnp.concatenate(ys, axis=1)


if __name__ == "__main__":
    B, C_in, C_out, T = 2, 32, 32, 16
    scale, K, dil = 4, 3, 1
    cin_c, cout_c = C_in // scale, C_out // scale

    key = jax.random.PRNGKey(0)
    params = []
    for _ in range(scale - 1):
        key, k1, k2, k3, k4 = jax.random.split(key, 5)
        w = 0.3 * jax.random.normal(k1, (K, cin_c, cout_c), jnp.float32)
        b = 0.1 * jax.random.normal(k2, (cout_c,), jnp.float32)
        g = 1.0 + 0.1 * jax.random.normal(k3, (cout_c,), jnp.float32)
        be = 0.1 * jax.random.normal(k4, (cout_c,), jnp.float32)
        params.append((w, b, g, be))

    key, kx = jax.random.split(key)
    x = jax.random.normal(kx, (B, C_in, T), jnp.float32)

    out = res2net_block(x, params, scale=scale, kernel_size=K, dilation=dil)
    out = jax.block_until_ready(out)

    assert out.shape == (B, C_out, T)
    assert bool(jnp.all(jnp.isfinite(out)))

    ref = jax.block_until_ready(
        _reference(x, params, scale=scale, kernel_size=K, dilation=dil))
    # Tolerance covers bf16 MXU inputs (f32 accumulation) vs the pure-f32 ref.
    np.testing.assert_allclose(np.asarray(out), np.asarray(ref),
                               rtol=5e-2, atol=5e-2)

    print("KERNEL_OK")
</pallas_src>

<mosaic_0001>
module attributes {stable_mosaic.version = 11 : i64} {
  func.func @_res2net_kernel(%arg0: i32, %arg1: memref<1x2x16x8xf32, #tpu.memory_space<vmem>>, %arg2: memref<1x24x8xf32, #tpu.memory_space<vmem>>, %arg3: memref<1x1x1x8xf32, #tpu.memory_space<vmem>>, %arg4: memref<1x1x1x8xf32, #tpu.memory_space<vmem>>, %arg5: memref<1x1x1x8xf32, #tpu.memory_space<vmem>>, %arg6: memref<1x2x16x8xf32, #tpu.memory_space<vmem>>, %arg7: memref<2x16x8xf32, #tpu.memory_space<vmem>>) attributes {dimension_semantics = [#tpu.dimension_semantics<arbitrary>], iteration_bounds = array<i64: 3>, scalar_prefetch = 0 : i64, scratch_operands = 1 : i64, tpu.core_type = #tpu.core_type<tc>, window_params = [{transform_indices = @transform_0, window_bounds = array<i64: 1, 2, 16, 8>}, {transform_indices = @transform_1, window_bounds = array<i64: 1, 24, 8>}, {transform_indices = @transform_2, window_bounds = array<i64: 1, 1, 1, 8>}, {transform_indices = @transform_3, window_bounds = array<i64: 1, 1, 1, 8>}, {transform_indices = @transform_4, window_bounds = array<i64: 1, 1, 1, 8>}, {transform_indices = @transform_5, window_bounds = array<i64: 1, 2, 16, 8>}]} {
    %c0_i32 = arith.constant 0 : i32
    %0 = arith.cmpi eq, %arg0, %c0_i32 : i32
    %1 = arith.extui %0 : i1 to i32
    %c0_i32_0 = arith.constant 0 : i32
    %2 = arith.cmpi ne, %1, %c0_i32_0 : i32
    scf.if %2 {
      %cst_35 = arith.constant 0.000000e+00 : f32
      %57 = vector.broadcast %cst_35 : f32 to vector<2x16x8xf32>
      %c0_36 = arith.constant 0 : index
      %c0_37 = arith.constant 0 : index
      %c0_38 = arith.constant 0 : index
      %58 = vector.load %arg7[%c0_36, %c0_37, %c0_38] : memref<2x16x8xf32, #tpu.memory_space<vmem>>, vector<2x16x8xf32>
      tpu.vector_store %arg7[%c0_36, %c0_37, %c0_38], %57 {strides = array<i32>} : memref<2x16x8xf32, #tpu.memory_space<vmem>>, vector<2x16x8xf32>,
    } else {
    }
    %c0 = arith.constant 0 : index
    %c0_1 = arith.constant 0 : index
    %c0_2 = arith.constant 0 : index
    %c0_3 = arith.constant 0 : index
    %3 = vector.load %arg1[%c0, %c0_1, %c0_2, %c0_3] : memref<1x2x16x8xf32, #tpu.memory_space<vmem>>, vector<1x2x16x8xf32>
    %4 = vector.shape_cast %3 : vector<1x2x16x8xf32> to vector<2x16x8xf32>
    %c0_4 = arith.constant 0 : index
    %c0_5 = arith.constant 0 : index
    %c0_6 = arith.constant 0 : index
    %5 = vector.load %arg7[%c0_4, %c0_5, %c0_6] : memref<2x16x8xf32, #tpu.memory_space<vmem>>, vector<2x16x8xf32>
    %6 = arith.addf %4, %5 : vector<2x16x8xf32>
    %7 = vector.extract_strided_slice %6 {offsets = [0, 1, 0], sizes = [2, 1, 8], strides = [1, 1, 1]} : vector<2x16x8xf32> to vector<2x1x8xf32>
    %8 = vector.extract_strided_slice %6 {offsets = [0, 14, 0], sizes = [2, 1, 8], strides = [1, 1, 1]} : vector<2x16x8xf32> to vector<2x1x8xf32>
    %9 = tpu.concatenate %7, %6, %8 in 1 : vector<2x1x8xf32>, vector<2x16x8xf32>, vector<2x1x8xf32> -> vector<2x18x8xf32>
    %10 = vector.extract_strided_slice %9 {offsets = [0, 0, 0], sizes = [2, 16, 8], strides = [1, 1, 1]} : vector<2x18x8xf32> to vector<2x16x8xf32>
    %11 = vector.extract_strided_slice %9 {offsets = [0, 1, 0], sizes = [2, 16, 8], strides = [1, 1, 1]} : vector<2x18x8xf32> to vector<2x16x8xf32>
    %12 = vector.extract_strided_slice %9 {offsets = [0, 2, 0], sizes = [2, 16, 8], strides = [1, 1, 1]} : vector<2x18x8xf32> to vector<2x16x8xf32>
    %13 = tpu.concatenate %10, %11, %12 in 2 : vector<2x16x8xf32>, vector<2x16x8xf32>, vector<2x16x8xf32> -> vector<2x16x24xf32>
    %14 = vector.shape_cast %13 : vector<2x16x24xf32> to vector<32x24xf32>
    %15 = arith.truncf %14 : vector<32x24xf32> to vector<32x24xbf16>
    %c0_7 = arith.constant 0 : index
    %c0_8 = arith.constant 0 : index
    %c0_9 = arith.constant 0 : index
    %16 = vector.load %arg2[%c0_7, %c0_8, %c0_9] : memref<1x24x8xf32, #tpu.memory_space<vmem>>, vector<1x24x8xf32>
    %17 = vector.shape_cast %16 : vector<1x24x8xf32> to vector<24x8xf32>
    %18 = arith.truncf %17 : vector<24x8xf32> to vector<24x8xbf16>
    %cst = arith.constant dense<0.000000e+00> : vector<32x8xf32>
    %19 = tpu.matmul %15, %18, %cst {dimension_numbers = #tpu.dot_dimension_numbers<[1], [0], [0], [1], [0, 0, 1, 1], [], []>} : vector<32x24xbf16>, vector<24x8xbf16>, vector<32x8xf32> -> vector<32x8xf32>
    %20 = vector.shape_cast %19 : vector<32x8xf32> to vector<2x16x8xf32>
    %c0_10 = arith.constant 0 : index
    %c0_11 = arith.constant 0 : index
    %c0_12 = arith.constant 0 : index
    %c0_13 = arith.constant 0 : index
    %21 = vector.load %arg3[%c0_10, %c0_11, %c0_12, %c0_13] : memref<1x1x1x8xf32, #tpu.memory_space<vmem>>, vector<1x1x1x8xf32>
    %22 = vector.shape_cast %21 : vector<1x1x1x8xf32> to vector<1x1x8xf32>
    %23 = vector.broadcast %22 : vector<1x1x8xf32> to vector<2x16x8xf32>
    %24 = arith.addf %20, %23 : vector<2x16x8xf32>
    %cst_14 = arith.constant 0.000000e+00 : f32
    %25 = vector.broadcast %cst_14 : f32 to vector<2x16x8xf32>
    %26 = arith.maximumf %24, %25 : vector<2x16x8xf32>
    %cst_15 = arith.constant dense<0.000000e+00> : vector<8xf32>
    %27 = vector.multi_reduction <add>, %26, %cst_15 [0, 1] : vector<2x16x8xf32> to vector<8xf32>
    %28 = vector.shape_cast %27 : vector<8xf32> to vector<1x1x8xf32>
    %29 = arith.mulf %26, %26 : vector<2x16x8xf32>
    %cst_16 = arith.constant dense<0.000000e+00> : vector<8xf32>
    %30 = vector.multi_reduction <add>, %29, %cst_16 [0, 1] : vector<2x16x8xf32> to vector<8xf32>
    %31 = vector.shape_cast %30 : vector<8xf32> to vector<1x1x8xf32>
    %cst_17 = arith.constant 3.125000e-02 : f32
    %32 = vector.broadcast %cst_17 : f32 to vector<1x1x8xf32>
    %33 = arith.mulf %28, %32 : vector<1x1x8xf32>
    %cst_18 = arith.constant 3.125000e-02 : f32
    %34 = vector.broadcast %cst_18 : f32 to vector<1x1x8xf32>
    %35 = arith.mulf %31, %34 : vector<1x1x8xf32>
    %36 = arith.mulf %33, %33 : vector<1x1x8xf32>
    %37 = arith.subf %35, %36 : vector<1x1x8xf32>
    %c0_19 = arith.constant 0 : index
    %c0_20 = arith.constant 0 : index
    %c0_21 = arith.constant 0 : index
    %c0_22 = arith.constant 0 : index
    %38 = vector.load %arg4[%c0_19, %c0_20, %c0_21, %c0_22] : memref<1x1x1x8xf32, #tpu.memory_space<vmem>>, vector<1x1x1x8xf32>
    %39 = vector.shape_cast %38 : vector<1x1x1x8xf32> to vector<1x1x8xf32>
    %40 = vector.broadcast %33 : vector<1x1x8xf32> to vector<2x16x8xf32>
    %41 = arith.subf %26, %40 : vector<2x16x8xf32>
    %42 = vector.broadcast %39 : vector<1x1x8xf32> to vector<2x16x8xf32>
    %43 = arith.mulf %42, %41 : vector<2x16x8xf32>
    %cst_23 = arith.constant 9.99999974E-6 : f32
    %44 = vector.broadcast %cst_23 : f32 to vector<1x1x8xf32>
    %45 = arith.addf %37, %44 : vector<1x1x8xf32>
    %46 = math.rsqrt %45 : vector<1x1x8xf32>
    %47 = vector.broadcast %46 : vector<1x1x8xf32> to vector<2x16x8xf32>
    %48 = arith.mulf %43, %47 : vector<2x16x8xf32>
    %c0_24 = arith.constant 0 : index
    %c0_25 = arith.constant 0 : index
    %c0_26 = arith.constant 0 : index
    %c0_27 = arith.constant 0 : index
    %49 = vector.load %arg5[%c0_24, %c0_25, %c0_26, %c0_27] : memref<1x1x1x8xf32, #tpu.memory_space<vmem>>, vector<1x1x1x8xf32>
    %50 = vector.shape_cast %49 : vector<1x1x1x8xf32> to vector<1x1x8xf32>
    %51 = vector.broadcast %50 : vector<1x1x8xf32> to vector<2x16x8xf32>
    %52 = arith.addf %48, %51 : vector<2x16x8xf32>
    %c0_28 = arith.constant 0 : index
    %c0_29 = arith.constant 0 : index
    %c0_30 = arith.constant 0 : index
    %c0_31 = arith.constant 0 : index
    %53 = vector.load %arg6[%c0_28, %c0_29, %c0_30, %c0_31] : memref<1x2x16x8xf32, #tpu.memory_space<vmem>>, vector<1x2x16x8xf32>
    %54 = vector.shape_cast %53 : vector<1x2x16x8xf32> to vector<2x16x8xf32>
    %55 = vector.shape_cast %52 : vector<2x16x8xf32> to vector<1x2x16x8xf32>
    tpu.vector_store %arg6[%c0_28, %c0_29, %c0_30, %c0_31], %55 {strides = array<i32>} : memref<1x2x16x8xf32, #tpu.memory_space<vmem>>, vector<1x2x16x8xf32>,
    %c0_32 = arith.constant 0 : index
    %c0_33 = arith.constant 0 : index
    %c0_34 = arith.constant 0 : index
    %56 = vector.load %arg7[%c0_32, %c0_33, %c0_34] : memref<2x16x8xf32, #tpu.memory_space<vmem>>, vector<2x16x8xf32>
    tpu.vector_store %arg7[%c0_32, %c0_33, %c0_34], %52 {strides = array<i32>} : memref<2x16x8xf32, #tpu.memory_space<vmem>>, vector<2x16x8xf32>,
    return
  }
  func.func @transform_0(%arg0: i32) -> (i32, i32, i32, i32) {
    %c1_i32 = arith.constant 1 : i32
    %0 = arith.addi %arg0, %c1_i32 : i32
    %c0_i32 = arith.constant 0 : i32
    %c0_i32_0 = arith.constant 0 : i32
    %c0_i32_1 = arith.constant 0 : i32
    %c0_i32_2 = arith.constant 0 : i32
    return %0, %c0_i32, %c0_i32_0, %c0_i32_1 : i32, i32, i32, i32
  }
  func.func @transform_1(%arg0: i32) -> (i32, i32, i32) {
    %c0_i32 = arith.constant 0 : i32
    %c0_i32_0 = arith.constant 0 : i32
    %c0_i32_1 = arith.constant 0 : i32
    return %arg0, %c0_i32, %c0_i32_0 : i32, i32, i32
  }
  func.func @transform_2(%arg0: i32) -> (i32, i32, i32, i32) {
    %c0_i32 = arith.constant 0 : i32
    %c0_i32_0 = arith.constant 0 : i32
    %c0_i32_1 = arith.constant 0 : i32
    %c0_i32_2 = arith.constant 0 : i32
    return %arg0, %c0_i32, %c0_i32_0, %c0_i32_1 : i32, i32, i32, i32
  }
  func.func @transform_3(%arg0: i32) -> (i32, i32, i32, i32) {
    %c0_i32 = arith.constant 0 : i32
    %c0_i32_0 = arith.constant 0 : i32
    %c0_i32_1 = arith.constant 0 : i32
    %c0_i32_2 = arith.constant 0 : i32
    return %arg0, %c0_i32, %c0_i32_0, %c0_i32_1 : i32, i32, i32, i32
  }
  func.func @transform_4(%arg0: i32) -> (i32, i32, i32, i32) {
    %c0_i32 = arith.constant 0 : i32
    %c0_i32_0 = arith.constant 0 : i32
    %c0_i32_1 = arith.constant 0 : i32
    %c0_i32_2 = arith.constant 0 : i32
    return %arg0, %c0_i32, %c0_i32_0, %c0_i32_1 : i32, i32, i32, i32
  }
  func.func @transform_5(%arg0: i32) -> (i32, i32, i32, i32) {
    %c0_i32 = arith.constant 0 : i32
    %c0_i32_0 = arith.constant 0 : i32
    %c0_i32_1 = arith.constant 0 : i32
    %c0_i32_2 = arith.constant 0 : i32
    return %arg0, %c0_i32, %c0_i32_0, %c0_i32_1 : i32, i32, i32, i32
  }
}

</mosaic_0001>

<bundles_post_ra>
// kernel: tpu_custom_call.1
= control target key start
LH: loop header
LB: loop body
LE: loop exit
PB: predicated region body
PF: predicated region fallthrough
CT: control target
= control target key end

     0   :  { %s763_s18 = smov 0   ;;  %s865_s0 = inlined_call_operand.vmem [shape: f32[4,2,16,8], index: 0, kind: input, shape index: {}]   ;;  %s866_s1 = inlined_call_operand.vmem [shape: f32[3,24,8], index: 1, kind: input, shape index: {}]   ;;  %s867_s2 = inlined_call_operand.vmem [shape: f32[3,1,1,8], index: 2, kind: input, shape index: {}]   ;;  %s868_s3 = inlined_call_operand.vmem [shape: f32[3,1,1,8], index: 3, kind: input, shape index: {}]   ;;  %s869_s4 = inlined_call_operand.vmem [shape: f32[3,1,1,8], index: 4, kind: input, shape index: {}]   ;;  %s870_s5 = inlined_call_operand.vmem [shape: f32[3,2,16,8], index: 5, kind: output, shape index: {}]  }
   0x1 LB: > { %s655_s19 = sadd.s32 4294967295, %s728_s18   ;;  %p659_p0 = scmp.ge.s32.totalorder %s728_s18, 1  ;;  %s728_s18 = sphi %s763_s18, %s15_s18  }
   0x2   : > { %p225_p1 = scmp.lt.s32.totalorder %s728_s18, 4 }
   0x4   : > { %p226_p2 = pnand %p659_p0, %p225_p1 }
   0x5   : > { %s268_s20 = sadd.s32 (!%p226_p2), 1, %s655_s19  ;;  %p275_p3 = scmp.lt.s32.totalorder (!%p226_p2), %s655_s19, 2 }
   0x6   : > { %229 = sbr.rel (%p226_p2) target bundleno = 424 (0x1a8), region = 40  ;;  %p269_p4 = scmp.lt.s32.totalorder (!%p226_p2), %s268_s20, 3 }
   0x7   : > { %p665_p5 = scmp.ne.s32.totalorder (!%p226_p2), %s655_s19, 0 }
   0xd   : > { %s771_s21 = scalar_select %p275_p3, %s655_s19, 2 }
   0xe   : > { %s872_s20 = smov (!%p269_p4, %s268_s20), 3  ;;  %298 = sbr.rel (%p665_p5) target bundleno = 21 (0x15), region = 44 }
   0xf   : > { %s688_s22 = smul.u32 24, %s771_s21  ;;  %s282_s25 = scalar_lea.vmem %s867_s2, %s771_s21  ;;  %vm299_vm0 = vcmask (!%p665_p5), 64512   ;;  %v730_v0 = vmov (!%p665_p5), 0.0  }
  0x10   : > { %s673_s26 = sshll.u32 %s872_s20, 5  ;;  %s285_s29 = scalar_lea.vmem %s868_s3, %s771_s21  ;;  %300 = vst.msk [vmem:[#allocation2] sm:$0xff] (!%p665_p5), %vm299_vm0, %v730_v0  ;;  %301 = vst.msk [vmem:[#allocation2 + $0x8] sm:$0xff] (!%p665_p5), %vm299_vm0, %v730_v0 }
  0x11   : > { %s273_s7 = scalar_lea.vmem %s865_s0, %s673_s26  ;;  %s788_s10 = scalar_lea.vmem %s866_s1, %s688_s22  ;;  %302 = vst.msk [vmem:[#allocation2 + $0x10] sm:$0xff] (!%p665_p5), %vm299_vm0, %v730_v0  ;;  %303 = vst.msk [vmem:[#allocation2 + $0x18] sm:$0xff] (!%p665_p5), %vm299_vm0, %v730_v0 }
  0x12   : > { %s288_s13 = scalar_lea.vmem %s869_s4, %s771_s21  ;;  %s674_s14 = sshll.u32 %s771_s21, 5 }
  0x13   : > { %s798_s17 = scalar_lea.vmem %s870_s5, %s674_s14 }
  0x15 PF: > { %v304_v1 = vld [vmem:[%s273_s7] sm:$0xff]  ;;  %v305_v2 = vld [vmem:[%s273_s7 + $0x8] sm:$0xff]  ;;  %v306_v6 = vld [vmem:[%s273_s7 + $0x10] sm:$0xff]  ;;  %vm324_vm1 = vcmask 1040384   ;;  %vm349_vm2 = vcmask 1046528   ;;  %vm372_vm3 = vcmask 1045504  }
  0x16   : > { %v307_v7 = vld [vmem:[%s273_s7 + $0x18] sm:$0xff]  ;;  %v407_v11 = vld [vmem:[%s788_s10] sm:$0xff]  ;;  %v408_v16 = vld [vmem:[%s788_s10 + $0x8] sm:$0xff]  ;;  %vm419_vm4 = vcmask 1043456   ;;  %s731_s19 = smov 8   ;;  %s732_s20 = smov 16  }
  0x17   : > { %v308_v3 = vld [vmem:[#allocation2] sm:$0xff]  ;;  %v309_v4 = vld [vmem:[#allocation2 + $0x8] sm:$0xff]  ;;  %v409_v17 = vld [vmem:[%s788_s10 + $0x10] sm:$0xff]  ;;  %v410_v20 = vpack.c.bf16 %v408_v16, %v407_v11  ;;  %vm395_vm5 = vcmask 64512   ;;  %vm400_vm6 = vcmask 130048   ;;  %vm412_vm7 = vcmask 195584  }
  0x18   : > { %v312_v5 = vadd.f32 %v308_v3, %v304_v1  ;;  %v313_v8 = vadd.f32 %v309_v4, %v305_v2  ;;  %v310_v9 = vld [vmem:[#allocation2 + $0x10] sm:$0xff]  ;;  %v311_v10 = vld [vmem:[#allocation2 + $0x18] sm:$0xff]  ;;  %v411_v21 = vpack.c.bf16 %v409_v17, %v409_v17 }
  0x19   : > { %v314_v14 = vadd.f32 %v310_v9, %v306_v6  ;;  %v315_v15 = vadd.f32 %v311_v10, %v307_v7  ;;  %679 = vmatprep.subr.bf16.mxu0 %v410_v20 }
  0x1a   : > { %v318_v12 = vrot.slane %v312_v5, 1  ;;  %v325_v13 = vrot.slane %v312_v5, 7  ;;  %v326_v18 = vrot.slane %v313_v8, 7  ;;  %v337_v19 = vrot.slane %v313_v8, 5  ;;  %680 = vmatpush3.bf16.msra.mxu0 %v410_v20 }
  0x1b   : > { %v319_v23 = vrot.slane %v314_v14, 1  ;;  %v328_v24 = vrot.slane %v314_v14, 7  ;;  %v329_v25 = vrot.slane %v315_v15, 7  ;;  %v338_v35 = vrot.slane %v315_v15, 5  ;;  %687 = vmatprep.subr.msk.bf16.mxu0 %vm419_vm4, %v411_v21  ;;  %v668_v15 = vld [vmem:[%s282_s25] ss:$0 sm:$0xff] }
  0x1c   : > { %v341_v22 = vsel %vm324_vm1, %v318_v12, %v325_v13  ;;  %v327_v26 = vsel %vm324_vm1, %v325_v13, %v326_v18  ;;  %v343_v27 = vsel %vm324_vm1, %v326_v18, %v337_v19  ;;  %v421_v50 = vsel %vm419_vm4, %v411_v21, 0 }
  0x1d   : > { %v350_v28 = vrot.slane %v341_v22, 1  ;;  %v373_v29 = vrot.slane %v341_v22, 2  ;;  %v351_v30 = vrot.slane %v327_v26, 1  ;;  %v353_v31 = vrot.slane %v343_v27, 1 }
  0x1e   : > { %v374_v32 = vrot.slane %v327_v26, 2  ;;  %v376_v33 = vrot.slane %v343_v27, 2  ;;  %v330_v34 = vsel %vm324_vm1, %v328_v24, %v329_v25  ;;  %v342_v36 = vsel %vm324_vm1, %v319_v23, %v328_v24  ;;  %682 = vmatpush3.bf16.msra.mxu0 %v421_v50 }
  0x1f   : > { %v352_v37 = vsel %vm349_vm2, %v350_v28, %v351_v30  ;;  %v354_v38 = vsel %vm349_vm2, %v351_v30, %v353_v31  ;;  %v344_v43 = vsel %vm324_vm1, %v329_v25, %v338_v35  ;;  %v355_v44 = vrot.slane %v342_v36, 1 }
  0x20   : > { %v375_v39 = vsel %vm372_vm3, %v373_v29, %v374_v32  ;;  %v377_v40 = vsel %vm372_vm3, %v374_v32, %v376_v33  ;;  %v700_v41 = vpack.i.bf16 %v354_v38, %v352_v37  ;;  %v356_v45 = vrot.slane %v330_v34, 1 }
  0x21   : > { %v710_v42 = vpack.i.bf16 %v377_v40, %v375_v39  ;;  %v358_v46 = vrot.slane %v344_v43, 1  ;;  %v378_v47 = vrot.slane %v342_v36, 2  ;;  %v379_v48 = vrot.slane %v330_v34, 2 }
  0x22   : > { %701 = vrot.lane.b32.xlu0 %v700_v41, %s731_s19  ;;  %v381_v49 = vrot.slane %v344_v43, 2  ;;  %v357_v51 = vsel %vm349_vm2, %v355_v44, %v356_v45 }
  0x23   : > { %711 = vrot.lane.b32.xlu1 %v710_v42, %s732_s20  ;;  %v359_v52 = vsel %vm349_vm2, %v356_v45, %v358_v46  ;;  %v380_v53 = vsel %vm372_vm3, %v378_v47, %v379_v48 }
  0x24   : > { %v705_v54 = vpack.i.bf16 %v359_v52, %v357_v51  ;;  %v382_v55 = vsel %vm372_vm3, %v379_v48, %v381_v49 }
  0x25   : > { %v715_v56 = vpack.i.bf16 %v382_v55, %v380_v53 }
  0x26   : > { %706 = vrot.lane.b32.xlu0 %v705_v54, %s731_s19 }
  0x27   : > { %716 = vrot.lane.b32.xlu1 %v715_v56, %s732_s20 }
  0x94   : > { %v702_v57 = vpop.permute.xlu0 %701 }
  0x95   : > { %v712_v58 = vpop.permute.xlu1 %711  ;;  %v704_v59 = vunpack.i.h.bf16 %v702_v57  ;;  %v703_v60 = vunpack.i.l.bf16 %v702_v57 }
  0x96   : > { %v714_v61 = vunpack.i.h.bf16 %v712_v58  ;;  %v713_v62 = vunpack.i.l.bf16 %v712_v58 }
  0x97   : > { %v396_v63 = vsel %vm395_vm5, %v341_v22, %v703_v60  ;;  %v397_v0 = vsel %vm395_vm5, %v327_v26, %v704_v59 }
  0x98   : > { %v707_v1 = vpop.permute.xlu0 %706  ;;  %v401_v2 = vsel %vm400_vm6, %v396_v63, %v713_v62  ;;  %v402_v3 = vsel %vm400_vm6, %v397_v0, %v714_v61 }
  0x99   : > { %v709_v4 = vunpack.i.h.bf16 %v707_v1  ;;  %v708_v5 = vunpack.i.l.bf16 %v707_v1  ;;  %v717_v6 = vpop.permute.xlu1 %716  ;;  %v405_v7 = vpack.c.bf16 %v402_v3, %v401_v2  ;;  %v669_v3 = vld [vmem:[%s285_s29] ss:$0 sm:$0xff] }
  0x9a   : > { %v719_v8 = vunpack.i.h.bf16 %v717_v6  ;;  %v718_v9 = vunpack.i.l.bf16 %v717_v6 }
  0x9b   : > { %v399_v10 = vsel %vm395_vm5, %v330_v34, %v709_v4  ;;  %v398_v11 = vsel %vm395_vm5, %v342_v36, %v708_v5  ;;  %683 = vmatprep.mubr.msk.bf16.mxu0 %vm412_vm7, %v405_v7 }
  0x9c   : > { %v403_v12 = vsel %vm400_vm6, %v398_v11, %v718_v9  ;;  %v404_v13 = vsel %vm400_vm6, %v399_v10, %v719_v8  ;;  %v670_v9 = vld [vmem:[%s288_s13] ss:$0 sm:$0xff] }
  0x9d   : > { %v406_v14 = vpack.c.bf16 %v404_v13, %v403_v12 }
  0x9f   : > { %684 = vmatmul.mubr.msk.bf16.vlgmr.msra.gmra.mrb[0].mxu0 %vm412_vm7, %v406_v14 }
 0x172   : > { %v685_v16 = vpop.f32.mrb[0].mxu0 }
 0x173   : > { %v481_v17 = vadd.f32 %v685_v16, %v668_v15  ;;  %v457_v18 = vpop.f32.mrb[1].mxu0 }
 0x174   : > { %v479_v19 = vadd.f32 %v668_v15, %v457_v18  ;;  %v686_v20 = vpop.f32.mrb[2].mxu0 }
 0x175   : > { %v482_v21 = vadd.f32 %v686_v20, %v668_v15  ;;  %v460_v22 = vpop.f32.mrb[3].mxu0  ;;  %v485_v23 = vmax.f32 %v481_v17, 0.0 }
 0x176   : > { %v483_v24 = vmax.f32 %v479_v19, 0.0  ;;  %v480_v25 = vadd.f32 %v668_v15, %v460_v22 }
 0x177   : > { %v486_v27 = vmax.f32 %v482_v21, 0.0  ;;  %v502_v29 = vmul.f32 %v485_v23, %v485_v23  ;;  %v490_v34 = vsel %vm395_vm5, %v485_v23, 0.0 }
 0x178   : > { %v500_v26 = vmul.f32 %v483_v24, %v483_v24  ;;  %v484_v28 = vmax.f32 %v480_v25, 0.0  ;;  %v487_v30 = vsel %vm395_vm5, %v483_v24, 0.0 }
 0x179   : > { %v503_v36 = vmul.f32 %v486_v27, %v486_v27  ;;  %v507_v40 = vsel %vm395_vm5, %v502_v29, 0.0  ;;  %v492_v41 = vsel %vm395_vm5, %v486_v27, 0.0 }
 0x17a   : > { %v488_v31 = vsel %vm395_vm5, %v484_v28, 0.0  ;;  %v501_v32 = vmul.f32 %v484_v28, %v484_v28  ;;  %v504_v35 = vsel %vm395_vm5, %v500_v26, 0.0 }
 0x17b   : > { %v489_v33 = vadd.f32 %v488_v31, %v487_v30  ;;  %v509_v44 = vsel %vm395_vm5, %v503_v36, 0.0 }
 0x17c   : > { %v505_v37 = vsel %vm395_vm5, %v501_v32, 0.0 }
 0x17d   : > { %v491_v38 = vadd.f32 %v490_v34, %v489_v33  ;;  %v506_v39 = vadd.f32 %v505_v37, %v504_v35 }
 0x17f   : > { %v493_v42 = vadd.f32 %v492_v41, %v491_v38  ;;  %v508_v43 = vadd.f32 %v507_v40, %v506_v39 }
 0x181   : > { %v494_v45 = vrot.slane %v493_v42, 4  ;;  %v510_v46 = vadd.f32 %v509_v44, %v508_v43 }
 0x183   : > { %v495_v47 = vadd.f32 %v494_v45, %v493_v42  ;;  %v511_v48 = vrot.slane %v510_v46, 4 }
 0x185   : > { %v496_v49 = vrot.slane %v495_v47, 2  ;;  %v512_v50 = vadd.f32 %v511_v48, %v510_v46 }
 0x187   : > { %v497_v51 = vadd.f32 %v496_v49, %v495_v47  ;;  %v513_v52 = vrot.slane %v512_v50, 2 }
 0x189   : > { %v498_v53 = vrot.slane %v497_v51, 1  ;;  %v514_v54 = vadd.f32 %v513_v52, %v512_v50 }
 0x18b   : > { %v499_v55 = vadd.f32 %v498_v53, %v497_v51  ;;  %v515_v56 = vrot.slane %v514_v54, 1 }
 0x18d   : > { %v516_v57 = vadd.f32 %v515_v56, %v514_v54  ;;  %v517_v58 = vmul.f32 0.03125, %v499_v55 }
 0x18f   : > { %v518_v59 = vmul.f32 0.03125, %v516_v57  ;;  %v519_v60 = vmul.f32 %v517_v58, %v517_v58  ;;  %v522_v61 = vsub.f32 %v483_v24, %v517_v58  ;;  %v523_v62 = vsub.f32 %v484_v28, %v517_v58 }
 0x190   : > { %v524_v63 = vsub.f32 %v485_v23, %v517_v58  ;;  %v525_v0 = vsub.f32 %v486_v27, %v517_v58 }
 0x191   : > { %v520_v1 = vsub.f32 %v518_v59, %v519_v60  ;;  %v532_v4 = vmul.f32 %v669_v3, %v522_v61  ;;  %v533_v5 = vmul.f32 %v669_v3, %v523_v62 }
 0x192   : > { %v534_v6 = vmul.f32 %v669_v3, %v524_v63  ;;  %v535_v7 = vmul.f32 %v669_v3, %v525_v0 }
 0x193   : > { %v536_v2 = vadd.f32 1e-05, %v520_v1 }
 0x195   : > { %720 = vrsqrt.f32 %v536_v2 }
 0x19f   : > { %v721_v8 = vpop.eup %720 }
 0x1a0   : > { %v538_v10 = vmul.f32 %v721_v8, %v532_v4  ;;  %v539_v11 = vmul.f32 %v721_v8, %v533_v5  ;;  %v540_v12 = vmul.f32 %v721_v8, %v534_v6  ;;  %v541_v13 = vmul.f32 %v721_v8, %v535_v7 }
 0x1a2   : > { %v549_v14 = vadd.f32 %v670_v9, %v538_v10  ;;  %v550_v15 = vadd.f32 %v670_v9, %v539_v11  ;;  %v551_v16 = vadd.f32 %v670_v9, %v540_v12  ;;  %v552_v17 = vadd.f32 %v670_v9, %v541_v13 }
 0x1a4   : > { %553 = vst.msk [vmem:[%s798_s17] sm:$0xff] %vm395_vm5, %v549_v14  ;;  %554 = vst.msk [vmem:[%s798_s17 + $0x8] sm:$0xff] %vm395_vm5, %v550_v15 }
 0x1a5   : > { %555 = vst.msk [vmem:[%s798_s17 + $0x10] sm:$0xff] %vm395_vm5, %v551_v16  ;;  %556 = vst.msk [vmem:[%s798_s17 + $0x18] sm:$0xff] %vm395_vm5, %v552_v17 }
 0x1a6   : > { %557 = vst.msk [vmem:[#allocation2] sm:$0xff] %vm395_vm5, %v549_v14  ;;  %558 = vst.msk [vmem:[#allocation2 + $0x8] sm:$0xff] %vm395_vm5, %v550_v15 }
 0x1a7   : > { %559 = vst.msk [vmem:[#allocation2 + $0x10] sm:$0xff] %vm395_vm5, %v551_v16  ;;  %560 = vst.msk [vmem:[#allocation2 + $0x18] sm:$0xff] %vm395_vm5, %v552_v17 }
 0x1a8 PF: > { %s15_s18 = sadd.s32 1, %s728_s18  }
 0x1a9   : > { %p12_p6 = scmp.ge.s32.totalorder %s15_s18, 5  }
 0x1ab   :  { %14 = sbr.rel (!%p12_p6) target bundleno = 1 (0x1), region = 86 }

</bundles_post_ra>
